<compile_context>
chip_gen: v7x
topology: tpu7x:2x2x1
jax: 0.10.0
libtpu: 0.0.40
codegen_flags: <defaults>
</compile_context>

<pallas_src>
import jax
import jax.numpy as jnp
from jax import lax
from jax.experimental import pallas as pl
from jax.experimental.pallas import tpu as pltpu


def _linear_kernel(x_ref, w_ref, b_ref, o_ref):
    # x_ref: (TB, F) VMEM tile; w_ref: (1, F) VMEM, resident across grid steps;
    # b_ref: (1,) SMEM scalar; o_ref: (1, TB) lane-dense VMEM tile.
    acc = lax.dot_general(
        w_ref[...], x_ref[...],
        dimension_numbers=(((1,), (1,)), ((), ())),   # (1,F) . (TB,F)^T -> (1,TB)
        preferred_element_type=jnp.float32,
    )
    o_ref[...] = (acc + b_ref[0]).astype(o_ref.dtype)


def _vmem_capacity_bytes():
    try:
        info = pltpu.get_tpu_info()
        cap = getattr(info, "vmem_capacity_bytes", None)
        if cap:
            return int(cap)
    except Exception:
        pass
    return 64 * 1024 * 1024          # conservative default: v7x per-core VMEM


def _choose_batch_tile(batch, n_features, itemsize, x_tile_budget_bytes):
    """Batch-tile rows: a multiple of 128, sized from a VMEM byte budget."""
    rows = x_tile_budget_bytes // max(1, n_features * itemsize)
    rows = max(128, min(int(rows), 65536) // 128 * 128)
    b_up = -(-batch // 128) * 128                     # batch rounded up to 128
    rows = min(rows, b_up)
    # v7x megacore: if one tile would swallow a large batch, split into >= 2
    # grid steps so the "parallel" axis gives the second TensorCore work.
    if rows >= b_up and b_up >= 4096:
        rows = (-(-(b_up // 2) // 128)) * 128
    return int(rows)


def init_net_params(key, n_features, dtype=jnp.float32):
    """nn.Linear(n_features, 1) init: U(-1/sqrt(fan_in), +1/sqrt(fan_in)).

    The weight keeps the PyTorch (out_features=1, in_features=F) layout, which
    is already lane-dense for the kernel — no transpose needed anywhere.
    """
    kw, kb = jax.random.split(key)
    bound = 1.0 / (n_features ** 0.5)
    weight = jax.random.uniform(kw, (1, n_features), dtype=dtype,
                                minval=-bound, maxval=bound)
    bias = jax.random.uniform(kb, (1,), dtype=dtype,
                              minval=-bound, maxval=bound)
    return weight, bias


def net_forward(x, weight, bias, *, tile_rows=None):
    """Net.forward: x (B, F), weight (1, F), bias (1,) -> (B, 1)."""
    B, F = x.shape
    itemsize = jnp.dtype(x.dtype).itemsize

    vmem_cap = _vmem_capacity_bytes()
    # ~1/8 of VMEM per x tile (double-buffered -> ~1/4), clamped to 4-16 MiB.
    x_tile_budget = min(16 * 1024 * 1024, max(4 * 1024 * 1024, vmem_cap // 8))
    vmem_limit = max(32 * 1024 * 1024, (vmem_cap * 3) // 4)   # 48 MiB on v7x, 96 MiB on v5e/v6e

    TB = tile_rows if tile_rows is not None else _choose_batch_tile(
        B, F, itemsize, x_tile_budget)
    num_tiles = int(pl.cdiv(B, TB))
    total = num_tiles * TB            # lane-dense output columns (>= B)

    out_row = pl.pallas_call(
        _linear_kernel,
        out_shape=jax.ShapeDtypeStruct((1, total), x.dtype),
        grid=(num_tiles,),
        in_specs=[
            # x: tiled over batch; ragged last block reads are clamped, the
            # garbage rows only produce garbage lanes that get sliced off.
            pl.BlockSpec((TB, F), lambda i: (i, 0)),
            # weight: lane-dense (1, F), VMEM-resident (constant index_map).
            pl.BlockSpec((1, F), lambda i: (0, 0)),
            # bias: scalar in SMEM.
            pl.BlockSpec(memory_space=pltpu.MemorySpace.SMEM),
        ],
        # Lane-dense output row: contiguous, unmasked (1, TB) stores.
        out_specs=pl.BlockSpec((1, TB), lambda i: (0, i)),
        compiler_params=pltpu.CompilerParams(
            dimension_semantics=("parallel",),        # megacore split on v7x
            vmem_limit_bytes=int(vmem_limit),
        ),
        cost_estimate=pl.CostEstimate(
            flops=2 * B * F,
            transcendentals=0,
            bytes_accessed=B * F * itemsize + F * itemsize + B * itemsize,
        ),
    )(x, weight, bias)

    # Back to nn.Linear's (B, 1); drops any lanes from the ragged last block.
    return out_row.reshape(-1)[:B].reshape(B, 1)


if __name__ == "__main__":
    key = jax.random.PRNGKey(0)
    kx1, kx2, kp = jax.random.split(key, 3)

    n_features = 32
    weight, bias = init_net_params(kp, n_features)

    fwd = jax.jit(net_forward, static_argnames=("tile_rows",))

    # Case 1: tiny batch (single block), default tiling.
    x1 = jax.random.normal(kx1, (8, n_features), dtype=jnp.float32)
    out1 = jax.block_until_ready(fwd(x1, weight, bias))
    ref1 = x1 @ weight.T + bias
    assert out1.shape == (8, 1)
    assert jnp.allclose(out1, ref1, atol=1e-5, rtol=1e-5), "mismatch (case 1)"

    # Case 2: multi-tile grid with a ragged last block (no padding of x).
    x2 = jax.random.normal(kx2, (300, n_features), dtype=jnp.float32)
    out2 = jax.block_until_ready(fwd(x2, weight, bias, tile_rows=128))
    ref2 = x2 @ weight.T + bias
    assert out2.shape == (300, 1)
    assert jnp.allclose(out2, ref2, atol=1e-5, rtol=1e-5), "mismatch (case 2)"

    print("KERNEL_OK")
</pallas_src>

<mosaic_0001>
module attributes {stable_mosaic.version = 11 : i64} {
  func.func @_linear_kernel(%arg0: i32, %arg1: memref<128x32xf32, #tpu.memory_space<vmem>>, %arg2: memref<1x32xf32, #tpu.memory_space<vmem>>, %arg3: memref<1xf32, #tpu.memory_space<smem>>, %arg4: memref<1x128xf32, #tpu.memory_space<vmem>>) attributes {dimension_semantics = [#tpu.dimension_semantics<parallel>], iteration_bounds = array<i64: 1>, scalar_prefetch = 0 : i64, scratch_operands = 0 : i64, tpu.core_type = #tpu.core_type<tc>, window_params = [{transform_indices = @transform_0, window_bounds = array<i64: 128, 32>}, {pipeline_mode = #tpu.pipeline_mode<synchronous>, transform_indices = @transform_1, window_bounds = array<i64: 1, 32>}, {transform_indices = @transform_2, window_bounds = array<i64: 1>}, {transform_indices = @transform_3, window_bounds = array<i64: 1, 128>}]} {
    %c0 = arith.constant 0 : index
    %c0_0 = arith.constant 0 : index
    %0 = vector.load %arg2[%c0, %c0_0] : memref<1x32xf32, #tpu.memory_space<vmem>>, vector<1x32xf32>
    %c0_1 = arith.constant 0 : index
    %c0_2 = arith.constant 0 : index
    %1 = vector.load %arg1[%c0_1, %c0_2] : memref<128x32xf32, #tpu.memory_space<vmem>>, vector<128x32xf32>
    %cst = arith.constant dense<0.000000e+00> : vector<1x128xf32>
    %2 = tpu.matmul %0, %1, %cst {dimension_numbers = #tpu.dot_dimension_numbers<[1], [1], [0], [0], [0, 0, 1, 0], [], []>} : vector<1x32xf32>, vector<128x32xf32>, vector<1x128xf32> -> vector<1x128xf32>
    %c0_3 = arith.constant 0 : index
    %3 = memref.load %arg3[%c0_3] : memref<1xf32, #tpu.memory_space<smem>>
    %4 = vector.broadcast %3 : f32 to vector<1x128xf32>
    %5 = arith.addf %2, %4 : vector<1x128xf32>
    %c0_4 = arith.constant 0 : index
    %c0_5 = arith.constant 0 : index
    %6 = vector.load %arg4[%c0_4, %c0_5] : memref<1x128xf32, #tpu.memory_space<vmem>>, vector<1x128xf32>
    tpu.vector_store %arg4[%c0_4, %c0_5], %5 {strides = array<i32>} : memref<1x128xf32, #tpu.memory_space<vmem>>, vector<1x128xf32>,
    return
  }
  func.func @transform_0(%arg0: i32) -> (i32, i32) {
    %c0_i32 = arith.constant 0 : i32
    %c0_i32_0 = arith.constant 0 : i32
    return %arg0, %c0_i32 : i32, i32
  }
  func.func @transform_1(%arg0: i32) -> (i32, i32) {
    %c0_i32 = arith.constant 0 : i32
    %c0_i32_0 = arith.constant 0 : i32
    %c0_i32_1 = arith.constant 0 : i32
    return %c0_i32, %c0_i32_0 : i32, i32
  }
  func.func @transform_2(%arg0: i32) -> i32 {
    %c0_i32 = arith.constant 0 : i32
    %c0_i32_0 = arith.constant 0 : i32
    return %c0_i32 : i32
  }
  func.func @transform_3(%arg0: i32) -> (i32, i32) {
    %c0_i32 = arith.constant 0 : i32
    %c0_i32_0 = arith.constant 0 : i32
    return %c0_i32, %arg0 : i32, i32
  }
}

</mosaic_0001>

<bundles_post_ra>
// kernel: net_forward.1
= control target key start
LH: loop header
LB: loop body
LE: loop exit
PB: predicated region body
PF: predicated region fallthrough
CT: control target
= control target key end

     0   :  { %9 = vsyncpa [#allocation4], 0  ;;  %s377_s0 = inlined_call_operand.hbm [shape: f32[8,32], index: 0, kind: input, shape index: {}]   ;;  %s378_s1 = inlined_call_operand.vmem [shape: f32[1,32], index: 1, kind: input, shape index: {}]   ;;  %s379_s2 = inlined_call_operand.<no memory space> [shape: f32[1], index: 2, kind: input, shape index: {}]   ;;  %s380_s3 = inlined_call_operand.vmem [shape: f32[1,128], index: 3, kind: output, shape index: {}]  }
   0x1   :  { %14 = vsyncadd [#allocation4], 1920  ;;  %s307_s12 = smov [#allocation3]   ;;  %s283_s16 = scalar_lea.hbm %s377_s0, 128 }
   0x2   :  { %s15_s13 = sshll.u32 %s307_s12, 4  ;;  %p284_p0 = scmp.ne.s32.totalorder %s377_s0, %s283_s16  ;;  %s16_s13 = int_to_ptr.vmem [resolvable:$true] %s15_s13 }
   0x3   :  { %p287_p1 = scmp.lt.u32.totalorder %s283_s16, %s377_s0 }
   0x5   :  { %p289_p2 = pnand %p287_p1, %p284_p0 }
   0x7   :  { %292 = shalt.err (!%p289_p2)
}
   0x8   :  { %s293_s21 = scalar_lea.vmem %s16_s13, 128  ;;  %s297_s22 = scalar_lea.vmem %s16_s13, 2048 }
   0x9   :  { %p294_p3 = scmp.ne.s32.totalorder %s16_s13, %s293_s21  ;;  %p298_p4 = scmp.lt.s32.totalorder %s16_s13, %s16_s13 }
   0xa   :  { %p299_p5 = scmp.lt.s32.totalorder %s297_s22, %s293_s21 }
   0xc   :  { %p300_p6 = por %p299_p5, %p298_p4 }
   0xe   :  { %p301_p7 = pnand %p300_p6, %p294_p3 }
  0x10   :  { %304 = shalt.err (!%p301_p7)
}
  0x11   :  { %s308_s23 = smov 128   ;;  %s309_s24 = smov 8  }
  0x12   :  { %21 = dma.hbm_to_vmem [thread:$0]  %s377_s0, 128, %s16_s13, [#allocation4], %s308_s23, %s308_s23, %s309_s24  }
  0x13   :  { %305 = dma.done.wait [#allocation4], 2048  }
  0x14   :  { %306 = vsyncadd [#allocation4], 4294965248  ;;  %v310_v0 = vmov 0.0|0.0   ;;  %vm311_vm0 = vmmov 0   ;;  %v312_v1 = vmov 0.0   ;;  %vm48_vm1 = vcmask 261120  }
  0x15   :  { %245 = vmatprep.subr.bf16.mxu0 %v310_v0  ;;  %242 = vmatprep.mubr.msk.f32.mxu0 %vm311_vm0, %v312_v1  ;;  %v30_v2 = vld [vmem:[#allocation3] sm:$0xff]  ;;  %v31_v3 = vld [vmem:[#allocation3 + $0x8] sm:$0xff]  ;;  %vm347_vm2 = vmpackc.low %vm48_vm1, %vm48_vm1  ;;  %v47_v28 = vstv %s379_s2 }
  0x16   :  { %v246_v5 = vpack.c.bf16 %v31_v3, %v30_v2  ;;  %v32_v6 = vld [vmem:[#allocation3 + $0x10] sm:$0xff]  ;;  %v33_v7 = vld [vmem:[#allocation3 + $0x18] sm:$0xff]  ;;  %v34_v9 = vld [vmem:[#allocation3 + $0x20] sm:$0xff] }
  0x17   :  { %v250_v8 = vpack.c.bf16 %v33_v7, %v32_v6  ;;  %v35_v10 = vld [vmem:[#allocation3 + $0x28] sm:$0xff]  ;;  %v36_v12 = vld [vmem:[#allocation3 + $0x30] sm:$0xff]  ;;  %v37_v13 = vld [vmem:[#allocation3 + $0x38] sm:$0xff] }
  0x18   :  { %248 = vmatpush3.bf16.xpose.msk.msra.mxu0 %vm347_vm2, %v246_v5  ;;  %v254_v11 = vpack.c.bf16 %v35_v10, %v34_v9  ;;  %v258_v14 = vpack.c.bf16 %v37_v13, %v36_v12  ;;  %v38_v15 = vld [vmem:[#allocation3 + $0x40] sm:$0xff]  ;;  %v39_v16 = vld [vmem:[#allocation3 + $0x48] sm:$0xff]  ;;  %v40_v18 = vld [vmem:[#allocation3 + $0x50] sm:$0xff] }
  0x19   :  { %249 = vmatprep.subr.bf16.mxu0 %v310_v0  ;;  %v262_v17 = vpack.c.bf16 %v39_v16, %v38_v15  ;;  %v41_v19 = vld [vmem:[#allocation3 + $0x58] sm:$0xff]  ;;  %v42_v21 = vld [vmem:[#allocation3 + $0x60] sm:$0xff]  ;;  %v43_v22 = vld [vmem:[#allocation3 + $0x68] sm:$0xff] }
  0x1a   :  { %v266_v20 = vpack.c.bf16 %v41_v19, %v40_v18  ;;  %v270_v23 = vpack.c.bf16 %v43_v22, %v42_v21  ;;  %v44_v24 = vld [vmem:[#allocation3 + $0x70] sm:$0xff]  ;;  %v45_v25 = vld [vmem:[#allocation3 + $0x78] sm:$0xff]  ;;  %v29_v27 = vld [vmem:[%s378_s1] sm:$0x1] }
  0x1b   :  { %v274_v26 = vpack.c.bf16 %v45_v25, %v44_v24 }
  0x20   :  { %252 = vmatpush3.bf16.xpose.msk.msra.mxu0 %vm347_vm2, %v250_v8 }
  0x21   :  { %253 = vmatprep.subr.bf16.mxu0 %v310_v0 }
  0x28   :  { %256 = vmatpush3.bf16.xpose.msk.msra.mxu0 %vm347_vm2, %v254_v11 }
  0x29   :  { %257 = vmatprep.subr.bf16.mxu0 %v310_v0 }
  0x30   :  { %260 = vmatpush3.bf16.xpose.msk.msra.mxu0 %vm347_vm2, %v258_v14 }
  0x31   :  { %261 = vmatprep.subr.bf16.mxu0 %v310_v0 }
  0x38   :  { %264 = vmatpush3.bf16.xpose.msk.msra.mxu0 %vm347_vm2, %v262_v17 }
  0x39   :  { %265 = vmatprep.subr.bf16.mxu0 %v310_v0 }
  0x40   :  { %268 = vmatpush3.bf16.xpose.msk.msra.mxu0 %vm347_vm2, %v266_v20 }
  0x41   :  { %269 = vmatprep.subr.bf16.mxu0 %v310_v0 }
  0x48   :  { %272 = vmatpush3.bf16.xpose.msk.msra.mxu0 %vm347_vm2, %v270_v23 }
  0x49   :  { %273 = vmatprep.subr.bf16.mxu0 %v310_v0 }
  0x50   :  { %276 = vmatpush3.bf16.xpose.msk.msra.mxu0 %vm347_vm2, %v274_v26 }
  0x57   :  { %243 = vmatmul.mubr.msk.f32.vlgmr.msra.gmra.mrb[0].mxu0 %vm48_vm1, %v29_v27 }
 0x12a   :  { %v166_v29 = vpop.f32.mrb[0].mxu0 }
 0x12b   :  { %v167_v30 = vadd.f32 %v166_v29, %v47_v28  ;;  %v244_v31 = vpop.f32.mrb[1].mxu0 }
 0x12d   :  { %170 = vst [vmem:[%s380_s3] sm:$0x1] %v167_v30 }
 0x12e   :  { %175 = vsyncpa [#allocation4], 1 }

</bundles_post_ra>
